<compile_context>
chip_gen: v7x
topology: tpu7x:2x2x1
jax: 0.10.0
libtpu: 0.0.40
codegen_flags: <defaults>
</compile_context>

<pallas_src>
import math
import functools
import numpy as np

import jax
import jax.numpy as jnp
from jax.experimental import pallas as pl
from jax.experimental.pallas import tpu as pltpu


# ----------------------------------------------------------------------------
# Generation-aware VMEM budget
# ----------------------------------------------------------------------------
@functools.lru_cache(maxsize=None)
def _vmem_limit_bytes():
    cap = 64 * 1024 * 1024                      # conservative default (v7x physical VMEM)
    try:
        cap = int(pltpu.get_tpu_info().vmem_capacity_bytes)
    except Exception:
        pass
    # Leave headroom below physical capacity; never request more than 112 MiB
    # (v5e / v6e have 128 MiB, v7x has 64 MiB).
    return int(min(max(cap - 8 * 1024 * 1024, 32 * 1024 * 1024), 112 * 1024 * 1024))


# ----------------------------------------------------------------------------
# Tiled matmul with K-accumulation (QKV projections and the final fc).
# The activation block is cast to the weight dtype (bf16) inside the kernel,
# so no standalone f32->bf16 convert pass touches HBM.
# ----------------------------------------------------------------------------
def _matmul_kernel(x_ref, w_ref, o_ref, acc_ref):
    @pl.when(pl.program_id(2) == 0)
    def _():
        acc_ref[...] = jnp.zeros_like(acc_ref)

    x = x_ref[...].astype(w_ref.dtype)          # fused cast (f32 -> bf16) in VMEM
    acc_ref[...] += jnp.dot(x, w_ref[...], preferred_element_type=jnp.float32)

    @pl.when(pl.program_id(2) == pl.num_programs(2) - 1)
    def _():
        o_ref[...] = acc_ref[...].astype(o_ref.dtype)


def _pick_tile(dim, target, align):
    """Largest tile <= target that evenly divides `dim` and is `align`-aligned;
    otherwise fall back to the full dimension (full-dim blocks are always legal)."""
    if dim <= target:
        return dim
    t = (target // align) * align
    while t >= align:
        if dim % t == 0:
            return t
        t -= align
    return dim


def pallas_matmul(x, w, out_dtype=jnp.float32):
    M, K = x.shape
    K2, N = w.shape
    assert K == K2
    # 16-aligned sublane blocks (bf16 min tile is (16,128)); bigger tiles for
    # better HBM streaming / fewer grid steps.
    tm = _pick_tile(M, 512, 16)
    tn = _pick_tile(N, 512, 128)
    tk = _pick_tile(K, 1024, 128)
    grid = (M // tm, N // tn, K // tk)
    return pl.pallas_call(
        _matmul_kernel,
        out_shape=jax.ShapeDtypeStruct((M, N), out_dtype),
        grid_spec=pltpu.PrefetchScalarGridSpec(
            num_scalar_prefetch=0,
            grid=grid,
            in_specs=[pl.BlockSpec((tm, tk), lambda i, j, k: (i, k)),
                      pl.BlockSpec((tk, tn), lambda i, j, k: (k, j))],
            out_specs=pl.BlockSpec((tm, tn), lambda i, j, k: (i, j)),
            scratch_shapes=[pltpu.VMEM((tm, tn), jnp.float32)]),
        compiler_params=pltpu.CompilerParams(
            dimension_semantics=("parallel", "parallel", "arbitrary"),
            vmem_limit_bytes=_vmem_limit_bytes()),
    )(x, w)


# ----------------------------------------------------------------------------
# Fused attention-core kernel: one (batch, query-tile) per grid step, heads
# processed by a static in-kernel loop.  Computes QK^T (scale pre-folded into
# W_Q) -> mask -> softmax -> 1x1 "conv" mix with dist/adj -> mask -> softmax
# -> attn @ V, writing ctx lane-dense as (tq, d_model).
# ----------------------------------------------------------------------------
def _softmax_lastdim(x):
    m = jnp.max(x, axis=-1, keepdims=True)
    e = jnp.exp(x - m)
    return e * pl.reciprocal(jnp.sum(e, axis=-1, keepdims=True), approx=True)


_NEG_BIG = -1000000000.0


def _attn_kernel(conv_w_ref, conv_b_ref,            # (3,), (1,) f32 in SMEM
                 q_ref, k_ref, v_ref,                # (1,tq,dm)/(1,L,dm) bf16
                 mask_ref, dist_ref, adj_ref,        # (1,tq,L) f32 (per batch)
                 ctx_ref, attn_ref,                  # (1,tq,dm) bf16, (1,H,tq,L)
                 *, n_heads, d_k):
    q = q_ref[0]                                     # (tq, d_model) bf16, pre-scaled
    k = k_ref[0]                                     # (L,  d_model) bf16
    v = v_ref[0]                                     # (L,  d_model) bf16
    mask = mask_ref[0] > 0.0                         # (tq, L) bool: True = masked

    w0 = conv_w_ref[0]
    w1 = conv_w_ref[1]
    w2 = conv_w_ref[2]
    b = conv_b_ref[0]

    # Head-invariant work, computed once per (batch, q-tile) and shared by all
    # heads: exp(-dist) with mask (masked_fill(+inf) then exp == 0), and the
    # 1x1-conv mix with the -1e9 fill folded in (exp(-1e9 + O(1)) == 0 in f32,
    # identical post-softmax to the reference's exact -1e9 fill).
    dist = jnp.where(mask, 0.0, jnp.exp(-dist_ref[0]))          # (tq, L) f32
    mix = jnp.where(mask, _NEG_BIG, w1 * dist + w2 * adj_ref[0] + b)

    ctx_parts = []
    for h in range(n_heads):                         # static unroll over heads
        lo = h * d_k
        q_h = q[:, lo:lo + d_k]                      # (tq, d_k) bf16
        k_h = k[:, lo:lo + d_k]                      # (L,  d_k) bf16
        v_h = v[:, lo:lo + d_k]                      # (L,  d_k) bf16

        s = jnp.einsum('qd,kd->qk', q_h, k_h,
                       preferred_element_type=jnp.float32)      # (tq, L) f32
        s = jnp.where(mask, _NEG_BIG, s)
        s = _softmax_lastdim(s)

        a = _softmax_lastdim(w0 * s + mix)
        attn_ref[0, h] = a.astype(attn_ref.dtype)

        ctx_parts.append(jnp.dot(a.astype(v_h.dtype), v_h,
                                 preferred_element_type=jnp.float32))

    # Merge heads in-kernel -> lane-dense (tq, d_model) store (no XLA transpose).
    ctx = jnp.concatenate(ctx_parts, axis=-1)
    ctx_ref[0] = ctx.astype(ctx_ref.dtype)


def _pick_block_q(L, n_heads, d_model, attn_itemsize, budget_bytes):
    """Largest 16-aligned query tile whose pipelined VMEM footprint fits."""
    def footprint(tq):
        per_buffer = (
            tq * d_model * 2                         # Q block (bf16)
            + 2 * L * d_model * 2                    # K + V blocks (bf16, resident)
            + 3 * tq * L * 4                         # mask / dist / adj (f32)
            + n_heads * tq * L * attn_itemsize       # attn output block
            + tq * d_model * 2)                      # ctx output block (bf16)
        temporaries = (n_heads + 8) * tq * L * 4     # live f32 softmax/mix temps
        return 2 * per_buffer + temporaries          # x2: double-buffered pipeline
    candidates = [t for t in (1024, 512, 256, 128, 64, 32, 16)
                  if t <= L and L % t == 0]
    for t in candidates:                             # descending; first fit wins
        if footprint(t) <= budget_bytes:
            return t
    return candidates[-1] if candidates else L       # full-L block is always legal


def attention_core(q, k, v, mask_f, dist_f, adj_f, conv_w, conv_b,
                   *, n_heads, d_model, col_blocks=(0, 0, 0),
                   attn_dtype=jnp.bfloat16):
    # q/k/v: (B, L, C) bf16 where C is d_model or 3*d_model (fused QKV slab);
    # col_blocks selects which d_model-wide column window holds Q / K / V.
    B, L, _ = q.shape
    d_k = d_model // n_heads
    vmem_limit = _vmem_limit_bytes()
    tq = _pick_block_q(L, n_heads, d_model, jnp.dtype(attn_dtype).itemsize,
                       int(vmem_limit * 0.85))
    nq = L // tq
    qc, kc, vc = col_blocks

    def q_map(col):
        return lambda bb, qi: (bb, qi, col)

    def kv_map(col):
        return lambda bb, qi: (bb, 0, col)

    def row_map(bb, qi):
        return (bb, qi, 0)

    kernel = functools.partial(_attn_kernel, n_heads=n_heads, d_k=d_k)

    grid_spec = pltpu.PrefetchScalarGridSpec(
        num_scalar_prefetch=0,
        # qi is the innermost grid axis: K/V block indices depend only on b,
        # so K/V stay resident in VMEM across all query tiles of a batch.
        grid=(B, nq),
        in_specs=[
            pl.BlockSpec(memory_space=pltpu.MemorySpace.SMEM),           # conv_w (3,)
            pl.BlockSpec(memory_space=pltpu.MemorySpace.SMEM),           # conv_b (1,)
            pl.BlockSpec((1, tq, d_model), q_map(qc)),                   # Q
            pl.BlockSpec((1, L, d_model), kv_map(kc)),                   # K
            pl.BlockSpec((1, L, d_model), kv_map(vc)),                   # V
            pl.BlockSpec((1, tq, L), row_map),                           # mask
            pl.BlockSpec((1, tq, L), row_map),                           # dist
            pl.BlockSpec((1, tq, L), row_map),                           # adj
        ],
        out_specs=[
            pl.BlockSpec((1, tq, d_model), row_map),                     # ctx (lane-dense)
            pl.BlockSpec((1, n_heads, tq, L), lambda bb, qi: (bb, 0, qi, 0)),  # attn
        ],
    )
    ctx, attn = pl.pallas_call(
        kernel,
        grid_spec=grid_spec,
        out_shape=(
            jax.ShapeDtypeStruct((B, L, d_model), jnp.bfloat16),
            jax.ShapeDtypeStruct((B, n_heads, L, L), attn_dtype),
        ),
        compiler_params=pltpu.CompilerParams(
            dimension_semantics=("parallel", "parallel"),
            vmem_limit_bytes=vmem_limit),
    )(conv_w, conv_b, q, k, v, mask_f, dist_f, adj_f)
    return ctx, attn


# ----------------------------------------------------------------------------
# One-time parameter preparation (hoisted out of the forward):
# transposes, 1/sqrt(d_k) folded into W_Q, bf16 casts, fused QKV weight.
# ----------------------------------------------------------------------------
def prepare_params(params, n_heads):
    d_model = params["W_Q"].shape[1]
    d_k = d_model // n_heads
    inv_sqrt_dk = 1.0 / math.sqrt(d_k)
    wq_t = (params["W_Q"].T * inv_sqrt_dk).astype(jnp.bfloat16)  # scale folded here
    wk_t = params["W_K"].T.astype(jnp.bfloat16)
    wv_t = params["W_V"].T.astype(jnp.bfloat16)
    wfc_t = params["fc"].T.astype(jnp.bfloat16)
    return {
        "w_qkv": jnp.concatenate([wq_t, wk_t, wv_t], axis=1),   # (d_model, 3*d_model)
        "wq_t": wq_t, "wk_t": wk_t, "wv_t": wv_t, "wfc_t": wfc_t,
        "conv_w": params["conv_w"].astype(jnp.float32),
        "conv_b": params["conv_b"].astype(jnp.float32),
        "d_model": d_model, "n_heads": n_heads,
    }


# ----------------------------------------------------------------------------
# Full module forward (glue in plain JAX, hot paths in Pallas)
# ----------------------------------------------------------------------------
def multi_head_attention(prepared, input_Q, input_K, input_V,
                         attn_mask, adj_matrix, dist_matrix, n_heads,
                         self_attention=None, attn_dtype=jnp.bfloat16):
    B, L, d_model = input_Q.shape
    if self_attention is None:
        # NOTE: identity check; pass self_attention=True explicitly under jit
        # with equal-but-distinct arrays to keep the fused-QKV fast path.
        self_attention = (input_K is input_Q) and (input_V is input_Q)

    fused_cols_ok = (d_model % 128 == 0)   # column-windowed BlockSpecs need 128-lane alignment

    if self_attention:
        # Fused QKV projection: activations read from HBM once.
        qkv = pallas_matmul(input_Q.reshape(B * L, d_model), prepared["w_qkv"],
                            out_dtype=jnp.bfloat16)
        if fused_cols_ok:
            # Attention kernel reads Q/K/V straight out of the fused slab via
            # column-windowed BlockSpecs -> no split/copy in HBM.
            qkv3 = qkv.reshape(B, L, 3 * d_model)
            q_arr = k_arr = v_arr = qkv3
            cols = (0, 1, 2)
        else:
            q_p, k_p, v_p = jnp.split(qkv, 3, axis=1)
            q_arr = q_p.reshape(B, L, d_model)
            k_arr = k_p.reshape(B, L, d_model)
            v_arr = v_p.reshape(B, L, d_model)
            cols = (0, 0, 0)
    else:
        q_arr = pallas_matmul(input_Q.reshape(B * L, d_model), prepared["wq_t"],
                              out_dtype=jnp.bfloat16).reshape(B, L, d_model)
        k_arr = pallas_matmul(input_K.reshape(B * L, d_model), prepared["wk_t"],
                              out_dtype=jnp.bfloat16).reshape(B, L, d_model)
        v_arr = pallas_matmul(input_V.reshape(B * L, d_model), prepared["wv_t"],
                              out_dtype=jnp.bfloat16).reshape(B, L, d_model)
        cols = (0, 0, 0)

    # Score maps stay (B, L, L): the kernel reuses them across heads.
    mask_f = attn_mask.astype(jnp.float32)
    dist_f = dist_matrix.astype(jnp.float32)
    adj_f = adj_matrix.astype(jnp.float32)

    ctx, attn = attention_core(q_arr, k_arr, v_arr, mask_f, dist_f, adj_f,
                               prepared["conv_w"], prepared["conv_b"],
                               n_heads=n_heads, d_model=d_model,
                               col_blocks=cols, attn_dtype=attn_dtype)

    # ctx is already (B, L, d_model) with heads merged -> feed fc directly.
    output = pallas_matmul(ctx.reshape(B * L, d_model), prepared["wfc_t"],
                           out_dtype=jnp.float32).reshape(B, L, d_model)
    return output, attn


# ----------------------------------------------------------------------------
# Pure-JAX reference (mirrors the PyTorch forward, eval mode, f32)
# ----------------------------------------------------------------------------
def reference(params, xq, xk, xv, attn_mask, adj, dist, n_heads):
    B, L, d_model = xq.shape
    d_k = d_model // n_heads

    def proj(x, W):
        return (x @ W.T).reshape(B, L, n_heads, d_k).transpose(0, 2, 1, 3)

    Q, K, V = proj(xq, params["W_Q"]), proj(xk, params["W_K"]), proj(xv, params["W_V"])

    dist_m = jnp.where(attn_mask, jnp.inf, dist)
    dist_m = jnp.exp(-dist_m)
    dist_m = jnp.broadcast_to(dist_m[:, None], (B, n_heads, L, L))
    adj_m = jnp.broadcast_to(adj[:, None], (B, n_heads, L, L))
    mask_m = jnp.broadcast_to(attn_mask[:, None], (B, n_heads, L, L))

    scores = Q @ jnp.swapaxes(K, -1, -2) / np.sqrt(d_k)
    scores = jnp.where(mask_m, -1e9, scores)
    scores = jax.nn.softmax(scores, axis=-1)

    cw, cb = params["conv_w"], params["conv_b"]
    weighted = cw[0] * scores + cw[1] * dist_m + cw[2] * adj_m + cb[0]
    weighted = jnp.where(mask_m, -1e9, weighted)
    attn = jax.nn.softmax(weighted, axis=-1)

    context = attn @ V
    context = context.transpose(0, 2, 1, 3).reshape(B, L, n_heads * d_k)
    out = context @ params["fc"].T
    return out, attn


# ----------------------------------------------------------------------------
if __name__ == "__main__":
    B, L, d_model, n_heads = 2, 8, 128, 4

    key = jax.random.PRNGKey(0)
    ks = jax.random.split(key, 12)

    # Deterministic synthetic parameters (PyTorch Linear weight shape = (out, in))
    scale = 1.0 / math.sqrt(d_model)
    params = {
        "W_Q": jax.random.normal(ks[0], (d_model, d_model), jnp.float32) * scale,
        "W_K": jax.random.normal(ks[1], (d_model, d_model), jnp.float32) * scale,
        "W_V": jax.random.normal(ks[2], (d_model, d_model), jnp.float32) * scale,
        "fc":  jax.random.normal(ks[3], (d_model, d_model), jnp.float32) * scale,
        # Conv2d(3 -> 1, kernel 1x1): weight (1,3,1,1) flattened to (3,), bias (1,)
        "conv_w": jax.random.normal(ks[4], (3,), jnp.float32) * 0.5,
        "conv_b": jax.random.normal(ks[5], (1,), jnp.float32) * 0.1,
    }

    # Inputs (self-attention: same tensor for Q/K/V, exercising the fused path)
    x_in = jax.random.normal(ks[6], (B, L, d_model), jnp.float32)
    attn_mask = jax.random.bernoulli(ks[9], 0.2, (B, L, L))          # bool, True=masked
    adj_matrix = jax.random.bernoulli(ks[10], 0.3, (B, L, L)).astype(jnp.float32)
    dist_matrix = jax.random.uniform(ks[11], (B, L, L), jnp.float32, 0.0, 3.0)

    prepared = prepare_params(params, n_heads)
    out, attn = multi_head_attention(prepared, x_in, x_in, x_in,
                                     attn_mask, adj_matrix, dist_matrix, n_heads)
    out = jax.block_until_ready(out)
    attn = jax.block_until_ready(attn)

    out_exp, attn_exp = reference(params, x_in, x_in, x_in,
                                  attn_mask, adj_matrix, dist_matrix, n_heads)

    # bf16 MXU operands / bf16 attn writeback vs. pure-f32 reference.
    attn_f32 = np.asarray(attn.astype(jnp.float32))
    np.testing.assert_allclose(attn_f32, np.asarray(attn_exp), rtol=2e-2, atol=2e-2)
    np.testing.assert_allclose(np.asarray(out), np.asarray(out_exp),
                               rtol=2e-2, atol=5e-2)

    print("KERNEL_OK")
</pallas_src>

<mosaic_0001>
module attributes {stable_mosaic.version = 11 : i64} {
  func.func @_matmul_kernel(%arg0: i32, %arg1: i32, %arg2: i32, %arg3: memref<16x128xf32, #tpu.memory_space<vmem>>, %arg4: memref<128x384xbf16, #tpu.memory_space<vmem>>, %arg5: memref<16x384xbf16, #tpu.memory_space<vmem>>, %arg6: memref<16x384xf32, #tpu.memory_space<vmem>>) attributes {dimension_semantics = [#tpu.dimension_semantics<parallel>, #tpu.dimension_semantics<parallel>, #tpu.dimension_semantics<arbitrary>], iteration_bounds = array<i64: 1, 1, 1>, scalar_prefetch = 0 : i64, scratch_operands = 1 : i64, tpu.core_type = #tpu.core_type<tc>, window_params = [{transform_indices = @transform_0, window_bounds = array<i64: 16, 128>}, {transform_indices = @transform_1, window_bounds = array<i64: 128, 384>}, {transform_indices = @transform_2, window_bounds = array<i64: 16, 384>}]} {
    %c0_i32 = arith.constant 0 : i32
    %0 = arith.cmpi eq, %arg2, %c0_i32 : i32
    %1 = arith.extui %0 : i1 to i32
    %c0_i32_0 = arith.constant 0 : i32
    %2 = arith.cmpi ne, %1, %c0_i32_0 : i32
    scf.if %2 {
      %cst_10 = arith.constant 0.000000e+00 : f32
      %13 = vector.broadcast %cst_10 : f32 to vector<16x384xf32>
      %c0_11 = arith.constant 0 : index
      %c0_12 = arith.constant 0 : index
      %14 = vector.load %arg6[%c0_11, %c0_12] : memref<16x384xf32, #tpu.memory_space<vmem>>, vector<16x384xf32>
      tpu.vector_store %arg6[%c0_11, %c0_12], %13 {strides = array<i32>} : memref<16x384xf32, #tpu.memory_space<vmem>>, vector<16x384xf32>,
    } else {
    }
    %c0 = arith.constant 0 : index
    %c0_1 = arith.constant 0 : index
    %3 = vector.load %arg3[%c0, %c0_1] : memref<16x128xf32, #tpu.memory_space<vmem>>, vector<16x128xf32>
    %4 = arith.truncf %3 : vector<16x128xf32> to vector<16x128xbf16>
    %c0_2 = arith.constant 0 : index
    %c0_3 = arith.constant 0 : index
    %5 = vector.load %arg6[%c0_2, %c0_3] : memref<16x384xf32, #tpu.memory_space<vmem>>, vector<16x384xf32>
    %c0_4 = arith.constant 0 : index
    %c0_5 = arith.constant 0 : index
    %6 = vector.load %arg4[%c0_4, %c0_5] : memref<128x384xbf16, #tpu.memory_space<vmem>>, vector<128x384xbf16>
    %cst = arith.constant dense<0.000000e+00> : vector<16x384xf32>
    %7 = tpu.matmul %4, %6, %cst {dimension_numbers = #tpu.dot_dimension_numbers<[1], [0], [0], [1], [0, 0, 1, 1], [], []>} : vector<16x128xbf16>, vector<128x384xbf16>, vector<16x384xf32> -> vector<16x384xf32>
    %8 = arith.addf %5, %7 : vector<16x384xf32>
    %c0_6 = arith.constant 0 : index
    %c0_7 = arith.constant 0 : index
    %9 = vector.load %arg6[%c0_6, %c0_7] : memref<16x384xf32, #tpu.memory_space<vmem>>, vector<16x384xf32>
    tpu.vector_store %arg6[%c0_6, %c0_7], %8 {strides = array<i32>} : memref<16x384xf32, #tpu.memory_space<vmem>>, vector<16x384xf32>,
    %c0_i32_8 = arith.constant 0 : i32
    %10 = arith.cmpi eq, %arg2, %c0_i32_8 : i32
    %11 = arith.extui %10 : i1 to i32
    %c0_i32_9 = arith.constant 0 : i32
    %12 = arith.cmpi ne, %11, %c0_i32_9 : i32
    scf.if %12 {
      %c0_10 = arith.constant 0 : index
      %c0_11 = arith.constant 0 : index
      %13 = vector.load %arg6[%c0_10, %c0_11] : memref<16x384xf32, #tpu.memory_space<vmem>>, vector<16x384xf32>
      %14 = arith.truncf %13 : vector<16x384xf32> to vector<16x384xbf16>
      %c0_12 = arith.constant 0 : index
      %c0_13 = arith.constant 0 : index
      %15 = vector.load %arg5[%c0_12, %c0_13] : memref<16x384xbf16, #tpu.memory_space<vmem>>, vector<16x384xbf16>
      tpu.vector_store %arg5[%c0_12, %c0_13], %14 {strides = array<i32>} : memref<16x384xbf16, #tpu.memory_space<vmem>>, vector<16x384xbf16>,
    } else {
    }
    return
  }
  func.func @transform_0(%arg0: i32, %arg1: i32, %arg2: i32) -> (i32, i32) {
    %c0_i32 = arith.constant 0 : i32
    return %arg0, %arg2 : i32, i32
  }
  func.func @transform_1(%arg0: i32, %arg1: i32, %arg2: i32) -> (i32, i32) {
    %c0_i32 = arith.constant 0 : i32
    return %arg2, %arg1 : i32, i32
  }
  func.func @transform_2(%arg0: i32, %arg1: i32, %arg2: i32) -> (i32, i32) {
    %c0_i32 = arith.constant 0 : i32
    return %arg0, %arg1 : i32, i32
  }
}

</mosaic_0001>

<bundles_post_ra>
// kernel: tpu_custom_call.1
= control target key start
LH: loop header
LB: loop body
LE: loop exit
PB: predicated region body
PF: predicated region fallthrough
CT: control target
= control target key end

     0   :  { %7 = vsyncpa [#allocation4], 0  ;;  %s609_s0 = inlined_call_operand.hbm [shape: f32[16,128], index: 0, kind: input, shape index: {}]   ;;  %s610_s1 = inlined_call_operand.hbm [shape: bf16[128,384], index: 1, kind: input, shape index: {}]   ;;  %s611_s2 = inlined_call_operand.hbm [shape: bf16[16,384], index: 2, kind: output, shape index: {}]  }
   0x1   :  { %8 = vsyncpa [#allocation7], 0 }
   0x2   :  { %9 = vsyncpa [#allocation5], 0  ;;  %s542_s9 = smov [#allocation3]   ;;  %s470_s13 = scalar_lea.hbm %s609_s0, 256 }
   0x3   :  { %s15_s10 = sshll.u32 %s542_s9, 4  ;;  %p471_p0 = scmp.ne.s32.totalorder %s609_s0, %s470_s13  ;;  %s16_s10 = int_to_ptr.vmem [resolvable:$true] %s15_s10 }
   0x4   :  { %p474_p1 = scmp.lt.u32.totalorder %s470_s13, %s609_s0 }
   0x6   :  { %p476_p2 = pnand %p474_p1, %p471_p0 }
   0x8   :  { %479 = shalt.err (!%p476_p2)
}
   0x9   :  { %s480_s18 = scalar_lea.vmem %s16_s10, 256  ;;  %p485_p4 = scmp.lt.s32.totalorder %s16_s10, %s16_s10 }
   0xa   :  { %p481_p3 = scmp.ne.s32.totalorder %s16_s10, %s480_s18  ;;  %p486_p5 = scmp.lt.s32.totalorder %s480_s18, %s480_s18 }
   0xc   :  { %p487_p6 = por %p486_p5, %p485_p4 }
   0xe   :  { %p488_p7 = pnand %p487_p6, %p481_p3 }
  0x10   :  { %491 = shalt.err (!%p488_p7)
}
  0x11   :  { %s543_s19 = smov 128   ;;  %s544_s20 = smov 8  }
  0x12   :  { %21 = dma.hbm_to_vmem [thread:$0]  %s609_s0, 256, %s16_s10, [#allocation4], %s543_s19, %s543_s19, %s544_s20  }
  0x13   :  { %s545_s23 = smov [#allocation6]   ;;  %s492_s27 = scalar_lea.hbm %s610_s1, 3072 }
  0x14   :  { %s27_s24 = sshll.u32 %s545_s23, 4  ;;  %p493_p8 = scmp.ne.s32.totalorder %s610_s1, %s492_s27  ;;  %s28_s24 = int_to_ptr.vmem [resolvable:$true] %s27_s24 }
  0x15   :  { %p496_p9 = scmp.lt.u32.totalorder %s492_s27, %s610_s1 }
  0x17   :  { %p498_p10 = pnand %p496_p9, %p493_p8 }
  0x19   :  { %501 = shalt.err (!%p498_p10)
}
  0x1a   :  { %s502_s4 = scalar_lea.vmem %s28_s24, 3072  ;;  %p507_p12 = scmp.lt.s32.totalorder %s28_s24, %s28_s24 }
  0x1b   :  { %p503_p11 = scmp.ne.s32.totalorder %s28_s24, %s502_s4  ;;  %p508_p13 = scmp.lt.s32.totalorder %s502_s4, %s502_s4 }
  0x1d   :  { %p509_p0 = por %p508_p13, %p507_p12 }
  0x1f   :  { %p510_p1 = pnand %p509_p0, %p503_p11 }
  0x21   :  { %513 = shalt.err (!%p510_p1)
}
  0x22   :  { %s546_s0 = smov 192   ;;  %s547_s5 = smov 12  }
  0x23   :  { %33 = dma.hbm_to_vmem [thread:$0]  %s610_s1, 3072, %s28_s24, [#allocation7], %s546_s0, %s546_s0, %s547_s5  }
  0x24   :  { %536 = dma.done.wait [#allocation4], 256  }
  0x25   :  { %537 = vsyncadd [#allocation4], 4294967040 }
  0x26   :  { %538 = dma.done.wait [#allocation7], 3072  }
  0x27   :  { %539 = vsyncadd [#allocation7], 4294964224  ;;  %v548_v0 = vmov 0.0   ;;  %vm549_vm0 = vmmov 0   ;;  %v550_v1 = vmov 0   ;;  %v51_v25 = vld [vmem:[#allocation3] sm:$0xff] }
  0x28   :  { %408 = vmatprep.subr.bf16.mxu1 %v548_v0  ;;  %424 = vmatprep.mubr.msk.bf16.mxu1 %vm549_vm0, %v548_v0  ;;  %v438_v2 = vld [vmem:[#allocation6 + $0x4] ss:$12 sps:$4 sm:$0xff]   ;;  %v440_v3 = vld [vmem:[#allocation6 + $0x8] ss:$12 sps:$4 sm:$0xff]   ;;  %v441_v4 = vld [vmem:[#allocation6] ss:$12 sps:$4 sm:$0xff]  }
  0x29   :  { %252 = vmatprep.mubr.bf16.mxu0 %v550_v1  ;;  %220 = vmatprep.subr.bf16.mxu0 %v438_v2  ;;  %v442_v5 = vld [vmem:[#allocation6 + $0x1c] ss:$12 sps:$4 sm:$0xff]   ;;  %v444_v6 = vld [vmem:[#allocation6 + $0x20] ss:$12 sps:$4 sm:$0xff]   ;;  %v445_v7 = vld [vmem:[#allocation6 + $0x18] ss:$12 sps:$4 sm:$0xff]  }
  0x2a   :  { %409 = vmatpush3.bf16.msra.mxu1 %v440_v3  ;;  %221 = vmatpush1.bf16.msra.mxu0 %v441_v4  ;;  %v446_v8 = vld [vmem:[#allocation6 + $0x34] ss:$12 sps:$4 sm:$0xff]   ;;  %v448_v9 = vld [vmem:[#allocation6 + $0x38] ss:$12 sps:$4 sm:$0xff]   ;;  %v449_v10 = vld [vmem:[#allocation6 + $0x30] ss:$12 sps:$4 sm:$0xff]  }
  0x2b   :  { %410 = vmatprep.subr.bf16.mxu1 %v548_v0  ;;  %222 = vmatprep.subr.bf16.mxu0 %v442_v5  ;;  %v450_v11 = vld [vmem:[#allocation6 + $0x4c] ss:$12 sps:$4 sm:$0xff]   ;;  %v452_v12 = vld [vmem:[#allocation6 + $0x50] ss:$12 sps:$4 sm:$0xff]   ;;  %v453_v13 = vld [vmem:[#allocation6 + $0x48] ss:$12 sps:$4 sm:$0xff]  }
  0x2c   :  { %v454_v14 = vld [vmem:[#allocation6 + $0x64] ss:$12 sps:$4 sm:$0xff]   ;;  %v456_v15 = vld [vmem:[#allocation6 + $0x68] ss:$12 sps:$4 sm:$0xff]   ;;  %v457_v16 = vld [vmem:[#allocation6 + $0x60] ss:$12 sps:$4 sm:$0xff]  }
  0x2d   :  { %v458_v17 = vld [vmem:[#allocation6 + $0x7c] ss:$12 sps:$4 sm:$0xff]   ;;  %v460_v18 = vld [vmem:[#allocation6 + $0x80] ss:$12 sps:$4 sm:$0xff]   ;;  %v461_v19 = vld [vmem:[#allocation6 + $0x78] ss:$12 sps:$4 sm:$0xff]  }
  0x2e   :  { %411 = vmatpush3.bf16.msra.mxu1 %v444_v6  ;;  %223 = vmatpush1.bf16.msra.mxu0 %v445_v7  ;;  %v462_v20 = vld [vmem:[#allocation6 + $0x94] ss:$12 sps:$4 sm:$0xff]   ;;  %v464_v21 = vld [vmem:[#allocation6 + $0x98] ss:$12 sps:$4 sm:$0xff]   ;;  %v465_v22 = vld [vmem:[#allocation6 + $0x90] ss:$12 sps:$4 sm:$0xff]  }
  0x2f   :  { %412 = vmatprep.subr.bf16.mxu1 %v548_v0  ;;  %224 = vmatprep.subr.bf16.mxu0 %v446_v8  ;;  %v466_v23 = vld [vmem:[#allocation6 + $0xac] ss:$12 sps:$4 sm:$0xff]   ;;  %v468_v24 = vld [vmem:[#allocation6 + $0xb0] ss:$12 sps:$4 sm:$0xff]   ;;  %v469_v27 = vld [vmem:[#allocation6 + $0xa8] ss:$12 sps:$4 sm:$0xff]  }
  0x30   :  { %v52_v26 = vld [vmem:[#allocation3 + $0x8] sm:$0xff]  ;;  %s551_s1 = smov [#allocation8]  }
  0x31   :  { %v53_v28 = vpack.c.bf16 %v52_v26, %v51_v25  ;;  %s354_s8 = sshll.u32 %s551_s1, 4  ;;  %s355_s8 = int_to_ptr.vmem [resolvable:$true] %s354_s8 }
  0x32   :  { %413 = vmatpush3.bf16.msra.mxu1 %v448_v9  ;;  %225 = vmatpush1.bf16.msra.mxu0 %v449_v10  ;;  %s514_s9 = scalar_lea.vmem %s355_s8, 384  ;;  %p519_p3 = scmp.lt.s32.totalorder %s355_s8, %s355_s8 }
  0x33   :  { %414 = vmatprep.subr.bf16.mxu1 %v548_v0  ;;  %226 = vmatprep.subr.bf16.mxu0 %v450_v11  ;;  %p515_p2 = scmp.ne.s32.totalorder %s355_s8, %s514_s9  ;;  %p520_p4 = scmp.lt.s32.totalorder %s514_s9, %s514_s9 }
  0x35   :  { %p521_p5 = por %p520_p4, %p519_p3 }
  0x36   :  { %415 = vmatpush3.bf16.msra.mxu1 %v452_v12  ;;  %227 = vmatpush1.bf16.msra.mxu0 %v453_v13 }
  0x37   :  { %416 = vmatprep.subr.bf16.mxu1 %v548_v0  ;;  %228 = vmatprep.subr.bf16.mxu0 %v454_v14  ;;  %p522_p6 = pnand %p521_p5, %p515_p2 }
  0x3a   :  { %417 = vmatpush3.bf16.msra.mxu1 %v456_v15  ;;  %229 = vmatpush1.bf16.msra.mxu0 %v457_v16 }
  0x3b   :  { %418 = vmatprep.subr.bf16.mxu1 %v548_v0  ;;  %230 = vmatprep.subr.bf16.mxu0 %v458_v17 }
  0x3e   :  { %419 = vmatpush3.bf16.msra.mxu1 %v460_v18  ;;  %231 = vmatpush1.bf16.msra.mxu0 %v461_v19 }
  0x3f   :  { %420 = vmatprep.subr.bf16.mxu1 %v548_v0  ;;  %232 = vmatprep.subr.bf16.mxu0 %v462_v20 }
  0x42   :  { %421 = vmatpush3.bf16.msra.mxu1 %v464_v21  ;;  %233 = vmatpush1.bf16.msra.mxu0 %v465_v22 }
  0x43   :  { %422 = vmatprep.subr.bf16.mxu1 %v548_v0  ;;  %234 = vmatprep.subr.bf16.mxu0 %v466_v23 }
  0x46   :  { %423 = vmatpush3.bf16.msra.mxu1 %v468_v24  ;;  %235 = vmatpush1.bf16.msra.mxu0 %v469_v27 }
  0x49   :  { %425 = vmatmul.mubr.bf16.vlgmr.msra.gmra.mrb[0].mxu1 %v53_v28  ;;  %253 = vmatmul.mubr.bf16.vlgmr.msra.gmra.mrb[0].mxu0 %v53_v28 }
 0x11c   :  { %v297_v29 = vpop.f32.mrb[0].mxu1  ;;  %v254_v31 = vpop.f32.mrb[0].mxu0 }
 0x11d   :  { %v396_v30 = vpack.c.bf16 %v297_v29, %v297_v29  ;;  %v426_v32 = vpop.f32.mrb[1].mxu1  ;;  %v256_v33 = vpop.f32.mrb[1].mxu0 }
 0x11e   :  { %v300_v34 = vpop.f32.mrb[2].mxu1  ;;  %v395_v35 = vpack.c.bf16 %v256_v33, %v254_v31  ;;  %v258_v37 = vpop.f32.mrb[2].mxu0 }
 0x11f   :  { %346 = vst [vmem:[#allocation8 + $0x8] sm:$0xf] %v396_v30  ;;  %v398_v36 = vpack.c.bf16 %v300_v34, %v300_v34  ;;  %v427_v38 = vpop.f32.mrb[3].mxu1  ;;  %v260_v39 = vpop.f32.mrb[3].mxu0 }
 0x120   :  { %345 = vst [vmem:[#allocation8] sm:$0xff] %v395_v35  ;;  %v397_v40 = vpack.c.bf16 %v260_v39, %v258_v37 }
 0x121   :  { %348 = vst [vmem:[#allocation8 + $0x14] sm:$0xf] %v398_v36 }
 0x122   :  { %347 = vst [vmem:[#allocation8 + $0xc] sm:$0xff] %v397_v40 }
 0x123   :  { %525 = shalt.err (!%p522_p6)
}
 0x124   :  { %s526_s12 = scalar_lea.hbm %s611_s2, 384 }
 0x125   :  { %p527_p7 = scmp.ne.s32.totalorder %s611_s2, %s526_s12  ;;  %p530_p8 = scmp.lt.u32.totalorder %s526_s12, %s611_s2 }
 0x127   :  { %p532_p9 = pnand %p530_p8, %p527_p7 }
 0x129   :  { %535 = shalt.err (!%p532_p9)
}
 0x12a   :  { %360 = dma.vmem_to_hbm [thread:$0]  %s355_s8, 384, %s611_s2, [#allocation5], %s546_s0, %s546_s0, %s547_s5  }
 0x12b   :  { %540 = dma.done.wait [#allocation5], 384  }
 0x12c   :  { %541 = vsyncadd [#allocation5], 4294966912 }
 0x12d   :  { %364 = vsyncpa [#allocation4], 1 }
 0x12e   :  { %365 = vsyncpa [#allocation7], 1 }
 0x12f   :  { %366 = vsyncpa [#allocation5], 1 }

</bundles_post_ra>
